<compile_context>
chip_gen: v7x
topology: tpu7x:2x2x1
jax: 0.10.0
libtpu: 0.0.40
codegen_flags: <defaults>
</compile_context>

<pallas_src>
import math

import jax
import jax.numpy as jnp
from jax.experimental import pallas as pl
from jax.experimental.pallas import tpu as pltpu


def _round_up(n, m):
    return pl.cdiv(n, m) * m


def _linear_kernel(x_ref, w_ref, b_ref, o_ref):
    # x_ref: (TB, D) f32 VMEM, w_ref: (1, D) f32 VMEM, b_ref: (1, 1) f32 SMEM,
    # o_ref: (TB, 1) f32 VMEM.
    x = x_ref[...]
    w = w_ref[...]                                     # broadcast over sublanes
    acc = jnp.sum(x * w, axis=-1, keepdims=True)       # VPU mul + XLU lane reduce
    o_ref[...] = (acc + b_ref[0, 0]).astype(o_ref.dtype)


def log_model_forward(x, weight, bias, *, block_rows=512):
    """x: (B, D) f32, weight: (1, D) f32 (PyTorch nn.Linear layout), bias: (1,) f32.

    Returns (B, 1) f32 == x @ weight.T + bias.
    """
    B, D = x.shape

    # Tile size: multiple of 8 (sublane), capped by the (padded) batch.
    tb = min(int(block_rows), int(_round_up(B, 8)))
    tb = int(_round_up(tb, 8))

    # Pad batch so the grid divides evenly; padded rows are sliced off below.
    b_pad = int(_round_up(B, tb))
    if b_pad != B:
        x = jnp.pad(x, ((0, b_pad - B), (0, 0)))
    grid = (b_pad // tb,)

    b_smem = bias.reshape(1, 1).astype(x.dtype)

    # Double-buffered x tile + out tile + weight + headroom; keep well under
    # the scoped default (16 MiB v5e / 32 MiB v6e,v7x) so it is safe everywhere.
    tile_bytes = tb * D * x.dtype.itemsize
    vmem_limit = min(max(4 * tile_bytes + (2 << 20), 8 << 20), 32 << 20)

    out = pl.pallas_call(
        _linear_kernel,
        out_shape=jax.ShapeDtypeStruct((b_pad, 1), x.dtype),
        grid_spec=pltpu.PrefetchScalarGridSpec(
            num_scalar_prefetch=0,
            grid=grid,
            in_specs=[
                pl.BlockSpec((tb, D), lambda i: (i, 0)),            # x tile
                pl.BlockSpec((1, D), lambda i: (0, 0)),             # weight (lane-dense)
                pl.BlockSpec(memory_space=pltpu.MemorySpace.SMEM),  # bias scalar
            ],
            out_specs=pl.BlockSpec((tb, 1), lambda i: (i, 0)),
        ),
        compiler_params=pltpu.CompilerParams(
            dimension_semantics=("parallel",),   # batch rows independent
            vmem_limit_bytes=vmem_limit,
        ),
    )(x, weight, b_smem)
    return out[:B]


def init_params(input_dim, key):
    # Mirror LogModel._init_weights:
    #   nn.init.xavier_normal_(weight) -> std = sqrt(2 / (fan_in + fan_out))
    #   nn.init.constant_(bias, 1 / bias.numel()) -> 1.0 (numel == 1)
    fan_in, fan_out = input_dim, 1
    std = math.sqrt(2.0 / (fan_in + fan_out))
    weight = std * jax.random.normal(key, (1, input_dim), dtype=jnp.float32)
    bias = jnp.full((1,), 1.0, dtype=jnp.float32)
    return weight, bias


if __name__ == "__main__":
    key = jax.random.PRNGKey(0)
    k_x, k_w = jax.random.split(key)

    input_dim = 10     # module default
    batch = 1024       # small, but exercises a 2-step batch-tiled grid (TB=512)

    x = jax.random.normal(k_x, (batch, input_dim), dtype=jnp.float32)
    weight, bias = init_params(input_dim, k_w)

    out = log_model_forward(x, weight, bias, block_rows=512)
    out = jax.block_until_ready(out)

    # Reference: same math as nn.Linear forward.
    ref = x @ weight.T + bias
    assert out.shape == (batch, 1)
    assert jnp.allclose(out, ref, atol=1e-5, rtol=1e-5), float(
        jnp.max(jnp.abs(out - ref)))

    # Ragged-batch path (padding + slice) sanity check.
    out_small = jax.block_until_ready(
        log_model_forward(x[:37], weight, bias, block_rows=512))
    ref_small = x[:37] @ weight.T + bias
    assert out_small.shape == (37, 1)
    assert jnp.allclose(out_small, ref_small, atol=1e-5, rtol=1e-5)

    print("KERNEL_OK")
</pallas_src>

<mosaic_0001>
module attributes {stable_mosaic.version = 11 : i64} {
  func.func @_linear_kernel(%arg0: i32, %arg1: memref<512x10xf32, #tpu.memory_space<vmem>>, %arg2: memref<1x10xf32, #tpu.memory_space<vmem>>, %arg3: memref<1x1xf32, #tpu.memory_space<smem>>, %arg4: memref<512x1xf32, #tpu.memory_space<vmem>>) attributes {dimension_semantics = [#tpu.dimension_semantics<parallel>], iteration_bounds = array<i64: 2>, scalar_prefetch = 0 : i64, scratch_operands = 0 : i64, tpu.core_type = #tpu.core_type<tc>, window_params = [{transform_indices = @transform_0, window_bounds = array<i64: 512, 10>}, {pipeline_mode = #tpu.pipeline_mode<synchronous>, transform_indices = @transform_1, window_bounds = array<i64: 1, 10>}, {transform_indices = @transform_2, window_bounds = array<i64: 1, 1>}, {transform_indices = @transform_3, window_bounds = array<i64: 512, 1>}]} {
    %c0 = arith.constant 0 : index
    %c0_0 = arith.constant 0 : index
    %0 = vector.load %arg1[%c0, %c0_0] : memref<512x10xf32, #tpu.memory_space<vmem>>, vector<512x10xf32>
    %c0_1 = arith.constant 0 : index
    %c0_2 = arith.constant 0 : index
    %1 = vector.load %arg2[%c0_1, %c0_2] : memref<1x10xf32, #tpu.memory_space<vmem>>, vector<1x10xf32>
    %2 = vector.broadcast %1 : vector<1x10xf32> to vector<512x10xf32>
    %3 = arith.mulf %0, %2 : vector<512x10xf32>
    %cst = arith.constant dense<0.000000e+00> : vector<512xf32>
    %4 = vector.multi_reduction <add>, %3, %cst [1] : vector<512x10xf32> to vector<512xf32>
    %5 = vector.shape_cast %4 : vector<512xf32> to vector<512x1xf32>
    %c0_3 = arith.constant 0 : index
    %c0_4 = arith.constant 0 : index
    %6 = memref.load %arg3[%c0_3, %c0_4] : memref<1x1xf32, #tpu.memory_space<smem>>
    %7 = vector.broadcast %6 : f32 to vector<512x1xf32>
    %8 = arith.addf %5, %7 : vector<512x1xf32>
    %c0_5 = arith.constant 0 : index
    %c0_6 = arith.constant 0 : index
    %9 = vector.load %arg4[%c0_5, %c0_6] : memref<512x1xf32, #tpu.memory_space<vmem>>, vector<512x1xf32>
    tpu.vector_store %arg4[%c0_5, %c0_6], %8 {strides = array<i32>} : memref<512x1xf32, #tpu.memory_space<vmem>>, vector<512x1xf32>,
    return
  }
  func.func @transform_0(%arg0: i32) -> (i32, i32) {
    %c0_i32 = arith.constant 0 : i32
    %c0_i32_0 = arith.constant 0 : i32
    return %arg0, %c0_i32 : i32, i32
  }
  func.func @transform_1(%arg0: i32) -> (i32, i32) {
    %c0_i32 = arith.constant 0 : i32
    %c0_i32_0 = arith.constant 0 : i32
    %c0_i32_1 = arith.constant 0 : i32
    return %c0_i32, %c0_i32_0 : i32, i32
  }
  func.func @transform_2(%arg0: i32) -> (i32, i32) {
    %c0_i32 = arith.constant 0 : i32
    %c0_i32_0 = arith.constant 0 : i32
    %c0_i32_1 = arith.constant 0 : i32
    return %c0_i32, %c0_i32_0 : i32, i32
  }
  func.func @transform_3(%arg0: i32) -> (i32, i32) {
    %c0_i32 = arith.constant 0 : i32
    %c0_i32_0 = arith.constant 0 : i32
    return %arg0, %c0_i32 : i32, i32
  }
}

</mosaic_0001>

<bundles_post_ra>
// kernel: tpu_custom_call.1
= control target key start
LH: loop header
LB: loop body
LE: loop exit
PB: predicated region body
PF: predicated region fallthrough
CT: control target
= control target key end

     0   :  { %s741_s14 = smov 0   ;;  %s1277_s0 = inlined_call_operand.vmem [shape: f32[1024,10], index: 0, kind: input, shape index: {}]   ;;  %s1278_s1 = inlined_call_operand.vmem [shape: f32[1,10], index: 1, kind: input, shape index: {}]   ;;  %s1279_s2 = inlined_call_operand.<no memory space> [shape: f32[1,1], index: 2, kind: input, shape index: {}]   ;;  %s1280_s3 = inlined_call_operand.vmem [shape: f32[1024,1], index: 3, kind: output, shape index: {}]  }
   0x1   :  { %8 = sst [smem:[#allocation2]] %s1279_s2 }
   0x2 LB: > { %s690_s15 = sadd.s32 4294967295, %s716_s14   ;;  %p694_p0 = scmp.ge.s32.totalorder %s716_s14, 1  ;;  %s716_s14 = sphi %s741_s14, %s14_s14  }
   0x3   : > { %p139_p1 = scmp.lt.s32.totalorder %s716_s14, 3 }
   0x5   : > { %p140_p2 = pnand %p694_p0, %p139_p1 }
   0x6   : > { %s695_s16 = sshll.u32 (!%p140_p2), %s690_s15, 6  ;;  %v755_v0 = vld [vmem:[%s1278_s1] ss:$0 sm:$0xff] (!%p140_p2)  ;;  %vm310_vm0 = vcmask (!%p140_p2), 80896   ;;  %s503_s22 = sld [smem:[#allocation2]] (!%p140_p2)  ;;  %vm569_vm1 = vcmask (!%p140_p2), 7168  }
   0x7   : > { %143 = sbr.rel (%p140_p2) target bundleno = 290 (0x122), region = 32  ;;  %p164_p3 = scmp.lt.s32.totalorder (!%p140_p2), %s695_s16, 127 }
   0xe   : > { %s1282_s16 = smov (!%p164_p3, %s695_s16), 127 }
   0xf   : > { %s696_s2 = sshll.u32 %s1282_s16, 3 }
  0x10   : > { %s762_s21 = scalar_lea.vmem %s1277_s0, %s696_s2  ;;  %s1080_s25 = scalar_lea.vmem %s1280_s3, %s696_s2 }
  0x11   : > { %v177_v1 = vld [vmem:[%s762_s21 + $0x10] sm:$0xff]  ;;  %v175_v2 = vld [vmem:[%s762_s21] sm:$0xff]  ;;  %v178_v3 = vld [vmem:[%s762_s21 + $0x18] sm:$0xff] }
  0x12   : > { %v248_v4 = vmul.f32 %v755_v0, %v177_v1  ;;  %v246_v5 = vmul.f32 %v755_v0, %v175_v2  ;;  %v249_v6 = vmul.f32 %v755_v0, %v178_v3  ;;  %v176_v7 = vld [vmem:[%s762_s21 + $0x8] sm:$0xff]  ;;  %v179_v10 = vld [vmem:[%s762_s21 + $0x20] sm:$0xff]  ;;  %v182_v17 = vld [vmem:[%s762_s21 + $0x38] sm:$0xff] }
  0x13   : > { %v247_v8 = vmul.f32 %v755_v0, %v176_v7  ;;  %v180_v9 = vld [vmem:[%s762_s21 + $0x28] sm:$0xff]  ;;  %v250_v16 = vmul.f32 %v755_v0, %v179_v10  ;;  %v181_v18 = vld [vmem:[%s762_s21 + $0x30] sm:$0xff]  ;;  %v183_v20 = vld [vmem:[%s762_s21 + $0x40] sm:$0xff]  ;;  %v253_v26 = vmul.f32 %v755_v0, %v182_v17 }
  0x14   : > { %v317_v11 = vsel %vm310_vm0, %v248_v4, 0.0  ;;  %v311_v12 = vsel %vm310_vm0, %v246_v5, 0.0  ;;  %v320_v13 = vsel %vm310_vm0, %v249_v6, 0.0  ;;  %v251_v15 = vmul.f32 %v755_v0, %v180_v9  ;;  %v184_v19 = vld [vmem:[%s762_s21 + $0x48] sm:$0xff]  ;;  %v186_v21 = vld [vmem:[%s762_s21 + $0x58] sm:$0xff]  ;;  %v185_v22 = vld [vmem:[%s762_s21 + $0x50] sm:$0xff] }
  0x15   : > { %318 = vadd.xlane.f32.xlu1 %v317_v11  ;;  %312 = vadd.xlane.f32.xlu0 %v311_v12  ;;  %v314_v14 = vsel %vm310_vm0, %v247_v8, 0.0  ;;  %v188_v23 = vld [vmem:[%s762_s21 + $0x68] sm:$0xff]  ;;  %v323_v25 = vsel %vm310_vm0, %v250_v16, 0.0  ;;  %v252_v27 = vmul.f32 %v755_v0, %v181_v18  ;;  %v187_v28 = vld [vmem:[%s762_s21 + $0x60] sm:$0xff]  ;;  %v190_v29 = vld [vmem:[%s762_s21 + $0x78] sm:$0xff]  ;;  %v255_v30 = vmul.f32 %v755_v0, %v184_v19 }
  0x16   : > { %v326_v24 = vsel %vm310_vm0, %v251_v15, 0.0  ;;  %v254_v31 = vmul.f32 %v755_v0, %v183_v20  ;;  %v257_v32 = vmul.f32 %v755_v0, %v186_v21  ;;  %v256_v33 = vmul.f32 %v755_v0, %v185_v22  ;;  %v189_v35 = vld [vmem:[%s762_s21 + $0x70] sm:$0xff]  ;;  %v192_v40 = vld [vmem:[%s762_s21 + $0x88] sm:$0xff]  ;;  %v191_v41 = vld [vmem:[%s762_s21 + $0x80] sm:$0xff] }
  0x17   : > { %v259_v34 = vmul.f32 %v755_v0, %v188_v23  ;;  %v258_v36 = vmul.f32 %v755_v0, %v187_v28  ;;  %v261_v37 = vmul.f32 %v755_v0, %v190_v29  ;;  %v332_v38 = vsel %vm310_vm0, %v253_v26, 0.0  ;;  %v194_v42 = vld [vmem:[%s762_s21 + $0x98] sm:$0xff]  ;;  %v208_v46 = vld [vmem:[%s762_s21 + $0x108] sm:$0xff]  ;;  %v207_v47 = vld [vmem:[%s762_s21 + $0x100] sm:$0xff] }
  0x18   : > { %v329_v39 = vsel %vm310_vm0, %v252_v27, 0.0  ;;  %v338_v43 = vsel %vm310_vm0, %v255_v30, 0.0  ;;  %v335_v44 = vsel %vm310_vm0, %v254_v31, 0.0  ;;  %v260_v45 = vmul.f32 %v755_v0, %v189_v35  ;;  %v210_v48 = vld [vmem:[%s762_s21 + $0x118] sm:$0xff]  ;;  %v209_v52 = vld [vmem:[%s762_s21 + $0x110] sm:$0xff]  ;;  %v212_v53 = vld [vmem:[%s762_s21 + $0x128] sm:$0xff] }
  0x19   : > { %321 = vadd.xlane.f32.xlu1 %v320_v13  ;;  %315 = vadd.xlane.f32.xlu0 %v314_v14  ;;  %v344_v49 = vsel %vm310_vm0, %v257_v32, 0.0  ;;  %v341_v50 = vsel %vm310_vm0, %v256_v33, 0.0  ;;  %v815_v51 = vsel %vm310_vm0, %v259_v34, 0.0  ;;  %v211_v54 = vld [vmem:[%s762_s21 + $0x120] sm:$0xff]  ;;  %v821_v55 = vsel %vm310_vm0, %v258_v36, 0.0  ;;  %v214_v59 = vld [vmem:[%s762_s21 + $0x138] sm:$0xff] }
  0x1a   : > { %v824_v56 = vsel %vm310_vm0, %v261_v37, 0.0  ;;  %v827_v57 = vmul.f32 %v755_v0, %v192_v40  ;;  %v830_v58 = vmul.f32 %v755_v0, %v191_v41  ;;  %v834_v60 = vmul.f32 %v755_v0, %v194_v42  ;;  %v213_v1 = vld [vmem:[%s762_s21 + $0x130] sm:$0xff]  ;;  %v216_v6 = vld [vmem:[%s762_s21 + $0x148] sm:$0xff]  ;;  %v215_v7 = vld [vmem:[%s762_s21 + $0x140] sm:$0xff] }
  0x1b   : > { %v279_v61 = vmul.f32 %v755_v0, %v208_v46  ;;  %v278_v62 = vmul.f32 %v755_v0, %v207_v47  ;;  %v281_v63 = vmul.f32 %v755_v0, %v210_v48  ;;  %v841_v2 = vsel %vm310_vm0, %v260_v45, 0.0  ;;  %v218_v8 = vld [vmem:[%s762_s21 + $0x158] sm:$0xff]  ;;  %v217_v13 = vld [vmem:[%s762_s21 + $0x150] sm:$0xff]  ;;  %v220_v14 = vld [vmem:[%s762_s21 + $0x168] sm:$0xff] }
  0x1c   : > { %v280_v3 = vmul.f32 %v755_v0, %v209_v52  ;;  %v283_v4 = vmul.f32 %v755_v0, %v212_v53  ;;  %v282_v5 = vmul.f32 %v755_v0, %v211_v54  ;;  %v285_v12 = vmul.f32 %v755_v0, %v214_v59  ;;  %v219_v15 = vld [vmem:[%s762_s21 + $0x160] sm:$0xff]  ;;  %v222_v20 = vld [vmem:[%s762_s21 + $0x178] sm:$0xff]  ;;  %v224_v30 = vld [vmem:[%s762_s21 + $0x188] sm:$0xff] }
  0x1d   : > { %327 = vadd.xlane.f32.xlu1 %v326_v24  ;;  %324 = vadd.xlane.f32.xlu0 %v323_v25  ;;  %v850_v9 = vsel %vm310_vm0, %v279_v61, 0.0  ;;  %v853_v10 = vsel %vm310_vm0, %v278_v62, 0.0  ;;  %v856_v11 = vsel %vm310_vm0, %v281_v63, 0.0  ;;  %v284_v19 = vmul.f32 %v755_v0, %v213_v1  ;;  %v221_v25 = vld [vmem:[%s762_s21 + $0x170] sm:$0xff]  ;;  %v223_v31 = vld [vmem:[%s762_s21 + $0x180] sm:$0xff]  ;;  %v226_v32 = vld [vmem:[%s762_s21 + $0x198] sm:$0xff] }
  0x1e   : > { %v863_v16 = vsel %vm310_vm0, %v280_v3, 0.0  ;;  %v866_v17 = vsel %vm310_vm0, %v283_v4, 0.0  ;;  %v869_v18 = vsel %vm310_vm0, %v282_v5, 0.0  ;;  %v874_v21 = vsel %vm310_vm0, %v285_v12, 0.0  ;;  %v225_v37 = vld [vmem:[%s762_s21 + $0x190] sm:$0xff]  ;;  %v232_v59 = vld [vmem:[%s762_s21 + $0x1c8] sm:$0xff] }
  0x1f   : > { %v287_v22 = vmul.f32 %v755_v0, %v216_v6  ;;  %v286_v23 = vmul.f32 %v755_v0, %v215_v7  ;;  %v289_v24 = vmul.f32 %v755_v0, %v218_v8  ;;  %v881_v26 = vsel %vm310_vm0, %v284_v19, 0.0  ;;  %v231_v61 = vld [vmem:[%s762_s21 + $0x1c0] sm:$0xff]  ;;  %v234_v62 = vld [vmem:[%s762_s21 + $0x1d8] sm:$0xff]  ;;  %v233_v5 = vld [vmem:[%s762_s21 + $0x1d0] sm:$0xff] }
  0x20   : > { %v288_v27 = vmul.f32 %v755_v0, %v217_v13  ;;  %v291_v28 = vmul.f32 %v755_v0, %v220_v14  ;;  %v290_v29 = vmul.f32 %v755_v0, %v219_v15  ;;  %v293_v36 = vmul.f32 %v755_v0, %v222_v20  ;;  %v236_v6 = vld [vmem:[%s762_s21 + $0x1e8] sm:$0xff]  ;;  %v235_v7 = vld [vmem:[%s762_s21 + $0x1e0] sm:$0xff]  ;;  %v238_v15 = vld [vmem:[%s762_s21 + $0x1f8] sm:$0xff] }
  0x21   : > { %333 = vadd.xlane.f32.xlu1 %v332_v38  ;;  %330 = vadd.xlane.f32.xlu0 %v329_v39  ;;  %v890_v33 = vsel %vm310_vm0, %v287_v22, 0.0  ;;  %v893_v34 = vsel %vm310_vm0, %v286_v23, 0.0  ;;  %v896_v35 = vsel %vm310_vm0, %v289_v24, 0.0  ;;  %v228_v38 = vld [vmem:[%s762_s21 + $0x1a8] sm:$0xff]  ;;  %v227_v39 = vld [vmem:[%s762_s21 + $0x1a0] sm:$0xff]  ;;  %v295_v46 = vmul.f32 %v755_v0, %v224_v30  ;;  %v237_v22 = vld [vmem:[%s762_s21 + $0x1f0] sm:$0xff] }
  0x22   : > { %v903_v40 = vsel %vm310_vm0, %v288_v27, 0.0  ;;  %v906_v41 = vsel %vm310_vm0, %v291_v28, 0.0  ;;  %v909_v42 = vsel %vm310_vm0, %v290_v29, 0.0  ;;  %v914_v45 = vsel %vm310_vm0, %v293_v36, 0.0  ;;  %v193_v23 = vld [vmem:[%s762_s21 + $0x90] sm:$0xff] }
  0x23   : > { %v294_v47 = vmul.f32 %v755_v0, %v223_v31  ;;  %v297_v48 = vmul.f32 %v755_v0, %v226_v32  ;;  %v296_v52 = vmul.f32 %v755_v0, %v225_v37  ;;  %v299_v53 = vmul.f32 %v755_v0, %v228_v38 }
  0x24   : > { %v298_v54 = vmul.f32 %v755_v0, %v227_v39  ;;  %v930_v63 = vsel %vm310_vm0, %v295_v46, 0.0  ;;  %v303_v20 = vmul.f32 %v755_v0, %v232_v59  ;;  %v307_v27 = vmul.f32 %v755_v0, %v236_v6  ;;  %v196_v46 = vld [vmem:[%s762_s21 + $0xa8] sm:$0xff] }
  0x25   : > { %339 = vadd.xlane.f32.xlu1 %v338_v43  ;;  %336 = vadd.xlane.f32.xlu0 %v335_v44  ;;  %v292_v43 = vmul.f32 %v755_v0, %v221_v25  ;;  %v230_v44 = vld [vmem:[%s762_s21 + $0x1b8] sm:$0xff]  ;;  %v933_v1 = vsel %vm310_vm0, %v294_v47, 0.0  ;;  %v936_v3 = vsel %vm310_vm0, %v297_v48, 0.0  ;;  %v945_v8 = vsel %vm310_vm0, %v296_v52, 0.0  ;;  %v195_v47 = vld [vmem:[%s762_s21 + $0xa0] sm:$0xff] }
  0x26   : > { %v301_v4 = vmul.f32 %v755_v0, %v230_v44  ;;  %v948_v12 = vsel %vm310_vm0, %v299_v53, 0.0  ;;  %v951_v13 = vsel %vm310_vm0, %v298_v54, 0.0  ;;  %v304_v25 = vmul.f32 %v755_v0, %v233_v5  ;;  %v198_v53 = vld [vmem:[%s762_s21 + $0xb8] sm:$0xff]  ;;  %v197_v54 = vld [vmem:[%s762_s21 + $0xb0] sm:$0xff]  ;;  %v199_v5 = vld [vmem:[%s762_s21 + $0xc0] sm:$0xff] }
  0x27   : > { %v306_v28 = vmul.f32 %v755_v0, %v235_v7  ;;  %v970_v29 = vsel %vm310_vm0, %v303_v20, 0.0  ;;  %v309_v32 = vmul.f32 %v755_v0, %v238_v15  ;;  %v985_v37 = vsel %vm310_vm0, %v307_v27, 0.0  ;;  %v202_v20 = vld [vmem:[%s762_s21 + $0xd8] sm:$0xff]  ;;  %v204_v27 = vld [vmem:[%s762_s21 + $0xe8] sm:$0xff] }
  0x28   : > { %v956_v19 = vsel %vm310_vm0, %v301_v4, 0.0  ;;  %v982_v36 = vsel %vm310_vm0, %v304_v25, 0.0  ;;  %v308_v39 = vmul.f32 %v755_v0, %v237_v22  ;;  %v266_v52 = vmul.f32 %v755_v0, %v195_v47  ;;  %v200_v4 = vld [vmem:[%s762_s21 + $0xc8] sm:$0xff] }
  0x29   : > { %345 = vadd.xlane.f32.xlu1 %v344_v49  ;;  %342 = vadd.xlane.f32.xlu0 %v341_v50  ;;  %v229_v49 = vld [vmem:[%s762_s21 + $0x1b0] sm:$0xff]  ;;  %v921_v50 = vsel %vm310_vm0, %v292_v43, 0.0  ;;  %v988_v38 = vsel %vm310_vm0, %v306_v28, 0.0  ;;  %v362_v43 = vsel %vm310_vm0, %v827_v57, 0.0  ;;  %v997_v44 = vsel %vm310_vm0, %v309_v32, 0.0  ;;  %v203_v28 = vld [vmem:[%s762_s21 + $0xe0] sm:$0xff] }
  0x2a   : > { %v300_v14 = vmul.f32 %v755_v0, %v229_v49  ;;  %v1002_v48 = vsel %vm310_vm0, %v308_v39, 0.0  ;;  %v368_v57 = vsel %vm310_vm0, %v834_v60, 0.0  ;;  %v268_v60 = vmul.f32 %v755_v0, %v197_v54 }
  0x2b   : > { %v270_v15 = vmul.f32 %v755_v0, %v199_v5 }
  0x2c   : > { %v964_v24 = vsel %vm310_vm0, %v300_v14, 0.0  ;;  %v377_v7 = vsel %vm310_vm0, %v268_v60, 0.0  ;;  %v271_v14 = vmul.f32 %v755_v0, %v200_v4 }
  0x2d   : > { %351 = vadd.xlane.f32.xlu1 %v815_v51  ;;  %348 = vadd.xlane.f32.xlu0 %v821_v55  ;;  %v302_v51 = vmul.f32 %v755_v0, %v231_v61  ;;  %v305_v55 = vmul.f32 %v755_v0, %v234_v62  ;;  %v371_v61 = vsel %vm310_vm0, %v266_v52, 0.0  ;;  %v269_v62 = vmul.f32 %v755_v0, %v198_v53 }
  0x2e   : > { %v383_v22 = vsel %vm310_vm0, %v270_v15, 0.0 }
  0x2f   : > { %v973_v30 = vsel %vm310_vm0, %v302_v51, 0.0  ;;  %v976_v31 = vsel %vm310_vm0, %v305_v55, 0.0  ;;  %v380_v6 = vsel %vm310_vm0, %v269_v62, 0.0  ;;  %v201_v51 = vld [vmem:[%s762_s21 + $0xd0] sm:$0xff]  ;;  %v386_v55 = vsel %vm310_vm0, %v271_v14, 0.0 }
  0x30   : > { %v272_v25 = vmul.f32 %v755_v0, %v201_v51 }
  0x31   : > { %357 = vadd.xlane.f32.xlu1 %v824_v56  ;;  %354 = vadd.xlane.f32.xlu0 %v841_v2  ;;  %v359_v56 = vsel %vm310_vm0, %v830_v58, 0.0  ;;  %v264_v2 = vmul.f32 %v755_v0, %v193_v23  ;;  %v267_v58 = vmul.f32 %v755_v0, %v196_v46  ;;  %v273_v23 = vmul.f32 %v755_v0, %v202_v20  ;;  %v205_v46 = vld [vmem:[%s762_s21 + $0xf0] sm:$0xff] }
  0x32   : > { %v389_v39 = vsel %vm310_vm0, %v272_v25, 0.0 }
  0x33   : > { %v365_v49 = vsel %vm310_vm0, %v264_v2, 0.0  ;;  %v374_v59 = vsel %vm310_vm0, %v267_v58, 0.0  ;;  %v392_v32 = vsel %vm310_vm0, %v273_v23, 0.0  ;;  %v206_v2 = vld [vmem:[%s762_s21 + $0xf8] sm:$0xff]  ;;  %v276_v58 = vmul.f32 %v755_v0, %v205_v46 }
  0x35   : > { %363 = vadd.xlane.f32.xlu1 %v362_v43  ;;  %360 = vadd.xlane.f32.xlu0 %v359_v56  ;;  %v275_v43 = vmul.f32 %v755_v0, %v204_v27  ;;  %v274_v56 = vmul.f32 %v755_v0, %v203_v28  ;;  %v401_v53 = vsel %vm310_vm0, %v276_v58, 0.0 }
  0x37   : > { %v398_v47 = vsel %vm310_vm0, %v275_v43, 0.0 }
  0x39   : > { %369 = vadd.xlane.f32.xlu1 %v368_v57  ;;  %366 = vadd.xlane.f32.xlu0 %v365_v49  ;;  %v395_v57 = vsel %vm310_vm0, %v274_v56, 0.0  ;;  %v277_v49 = vmul.f32 %v755_v0, %v206_v2  ;;  %v1073_v0 = vstv %s503_s22 }
  0x3b   : > { %v404_v52 = vsel %vm310_vm0, %v277_v49, 0.0 }
  0x3d   : > { %375 = vadd.xlane.f32.xlu1 %v374_v59  ;;  %372 = vadd.xlane.f32.xlu0 %v371_v61 }
  0x41   : > { %381 = vadd.xlane.f32.xlu1 %v380_v6  ;;  %378 = vadd.xlane.f32.xlu0 %v377_v7 }
  0x45   : > { %387 = vadd.xlane.f32.xlu1 %v386_v55  ;;  %384 = vadd.xlane.f32.xlu0 %v383_v22 }
  0x49   : > { %393 = vadd.xlane.f32.xlu1 %v392_v32  ;;  %390 = vadd.xlane.f32.xlu0 %v389_v39 }
  0x4d   : > { %399 = vadd.xlane.f32.xlu1 %v398_v47  ;;  %396 = vadd.xlane.f32.xlu0 %v395_v57 }
  0x51   : > { %405 = vadd.xlane.f32.xlu1 %v404_v52  ;;  %402 = vadd.xlane.f32.xlu0 %v401_v53 }
  0x55   : > { %411 = vadd.xlane.f32.xlu1 %v850_v9  ;;  %408 = vadd.xlane.f32.xlu0 %v853_v10 }
  0x59   : > { %417 = vadd.xlane.f32.xlu1 %v856_v11  ;;  %414 = vadd.xlane.f32.xlu0 %v863_v16 }
  0x5d   : > { %423 = vadd.xlane.f32.xlu1 %v866_v17  ;;  %420 = vadd.xlane.f32.xlu0 %v869_v18 }
  0x61   : > { %429 = vadd.xlane.f32.xlu1 %v874_v21  ;;  %426 = vadd.xlane.f32.xlu0 %v881_v26 }
  0x65   : > { %435 = vadd.xlane.f32.xlu1 %v890_v33  ;;  %432 = vadd.xlane.f32.xlu0 %v893_v34 }
  0x69   : > { %441 = vadd.xlane.f32.xlu1 %v896_v35  ;;  %438 = vadd.xlane.f32.xlu0 %v903_v40 }
  0x6d   : > { %447 = vadd.xlane.f32.xlu1 %v906_v41  ;;  %444 = vadd.xlane.f32.xlu0 %v909_v42 }
  0x71   : > { %453 = vadd.xlane.f32.xlu1 %v914_v45  ;;  %450 = vadd.xlane.f32.xlu0 %v921_v50 }
  0x75   : > { %459 = vadd.xlane.f32.xlu1 %v930_v63  ;;  %456 = vadd.xlane.f32.xlu0 %v933_v1 }
  0x79   : > { %465 = vadd.xlane.f32.xlu1 %v936_v3  ;;  %462 = vadd.xlane.f32.xlu0 %v945_v8 }
  0x7d   : > { %471 = vadd.xlane.f32.xlu1 %v948_v12  ;;  %468 = vadd.xlane.f32.xlu0 %v951_v13 }
  0x81   : > { %477 = vadd.xlane.f32.xlu1 %v956_v19  ;;  %474 = vadd.xlane.f32.xlu0 %v964_v24 }
  0x85   : > { %483 = vadd.xlane.f32.xlu1 %v970_v29  ;;  %480 = vadd.xlane.f32.xlu0 %v973_v30 }
  0x89   : > { %489 = vadd.xlane.f32.xlu1 %v976_v31  ;;  %486 = vadd.xlane.f32.xlu0 %v982_v36 }
  0x8d   : > { %495 = vadd.xlane.f32.xlu1 %v985_v37  ;;  %492 = vadd.xlane.f32.xlu0 %v988_v38 }
  0x91   : > { %501 = vadd.xlane.f32.xlu1 %v997_v44  ;;  %498 = vadd.xlane.f32.xlu0 %v1002_v48 }
  0xa2   : > { %v319_v9 = vpop.xlane.xlu1 %318  ;;  %v313_v10 = vpop.xlane.xlu0 %312 }
  0xa3   : > { %v507_v11 = vadd.f32 %v1073_v0, %v319_v9  ;;  %v505_v16 = vadd.f32 %v1073_v0, %v313_v10 }
  0xa5   : > { %572 = vst.msk [vmem:[%s1080_s25 + $0x10] sm:$0xff] %vm569_vm1, %v507_v11  ;;  %570 = vst.msk [vmem:[%s1080_s25] sm:$0xff] %vm569_vm1, %v505_v16 }
  0xa6   : > { %v322_v17 = vpop.xlane.xlu1 %321  ;;  %v316_v18 = vpop.xlane.xlu0 %315 }
  0xa7   : > { %v508_v21 = vadd.f32 %v1073_v0, %v322_v17  ;;  %v506_v26 = vadd.f32 %v1073_v0, %v316_v18 }
  0xa9   : > { %573 = vst.msk [vmem:[%s1080_s25 + $0x18] sm:$0xff] %vm569_vm1, %v508_v21  ;;  %571 = vst.msk [vmem:[%s1080_s25 + $0x8] sm:$0xff] %vm569_vm1, %v506_v26 }
  0xaa   : > { %v328_v33 = vpop.xlane.xlu1 %327  ;;  %v325_v34 = vpop.xlane.xlu0 %324 }
  0xab   : > { %v510_v35 = vadd.f32 %v1073_v0, %v328_v33  ;;  %v509_v40 = vadd.f32 %v1073_v0, %v325_v34 }
  0xad   : > { %575 = vst.msk [vmem:[%s1080_s25 + $0x28] sm:$0xff] %vm569_vm1, %v510_v35  ;;  %574 = vst.msk [vmem:[%s1080_s25 + $0x20] sm:$0xff] %vm569_vm1, %v509_v40 }
  0xae   : > { %v334_v41 = vpop.xlane.xlu1 %333  ;;  %v331_v42 = vpop.xlane.xlu0 %330 }
  0xaf   : > { %v512_v45 = vadd.f32 %v1073_v0, %v334_v41  ;;  %v511_v50 = vadd.f32 %v1073_v0, %v331_v42 }
  0xb1   : > { %577 = vst.msk [vmem:[%s1080_s25 + $0x38] sm:$0xff] %vm569_vm1, %v512_v45  ;;  %576 = vst.msk [vmem:[%s1080_s25 + $0x30] sm:$0xff] %vm569_vm1, %v511_v50 }
  0xb2   : > { %v340_v63 = vpop.xlane.xlu1 %339  ;;  %v337_v1 = vpop.xlane.xlu0 %336 }
  0xb3   : > { %v514_v3 = vadd.f32 %v1073_v0, %v340_v63  ;;  %v513_v8 = vadd.f32 %v1073_v0, %v337_v1 }
  0xb5   : > { %579 = vst.msk [vmem:[%s1080_s25 + $0x48] sm:$0xff] %vm569_vm1, %v514_v3  ;;  %578 = vst.msk [vmem:[%s1080_s25 + $0x40] sm:$0xff] %vm569_vm1, %v513_v8 }
  0xb6   : > { %v346_v12 = vpop.xlane.xlu1 %345  ;;  %v343_v13 = vpop.xlane.xlu0 %342 }
  0xb7   : > { %v516_v19 = vadd.f32 %v1073_v0, %v346_v12  ;;  %v515_v24 = vadd.f32 %v1073_v0, %v343_v13 }
  0xb9   : > { %581 = vst.msk [vmem:[%s1080_s25 + $0x58] sm:$0xff] %vm569_vm1, %v516_v19  ;;  %580 = vst.msk [vmem:[%s1080_s25 + $0x50] sm:$0xff] %vm569_vm1, %v515_v24 }
  0xba   : > { %v352_v29 = vpop.xlane.xlu1 %351  ;;  %v349_v30 = vpop.xlane.xlu0 %348 }
  0xbb   : > { %v518_v31 = vadd.f32 %v1073_v0, %v352_v29  ;;  %v517_v36 = vadd.f32 %v1073_v0, %v349_v30 }
  0xbd   : > { %583 = vst.msk [vmem:[%s1080_s25 + $0x68] sm:$0xff] %vm569_vm1, %v518_v31  ;;  %582 = vst.msk [vmem:[%s1080_s25 + $0x60] sm:$0xff] %vm569_vm1, %v517_v36 }
  0xbe   : > { %v358_v37 = vpop.xlane.xlu1 %357  ;;  %v355_v38 = vpop.xlane.xlu0 %354 }
  0xbf   : > { %v520_v44 = vadd.f32 %v1073_v0, %v358_v37  ;;  %v519_v48 = vadd.f32 %v1073_v0, %v355_v38 }
  0xc1   : > { %585 = vst.msk [vmem:[%s1080_s25 + $0x78] sm:$0xff] %vm569_vm1, %v520_v44  ;;  %584 = vst.msk [vmem:[%s1080_s25 + $0x70] sm:$0xff] %vm569_vm1, %v519_v48 }
  0xc2   : > { %v364_v54 = vpop.xlane.xlu1 %363  ;;  %v361_v59 = vpop.xlane.xlu0 %360 }
  0xc3   : > { %v522_v61 = vadd.f32 %v1073_v0, %v364_v54  ;;  %v521_v62 = vadd.f32 %v1073_v0, %v361_v59 }
  0xc5   : > { %587 = vst.msk [vmem:[%s1080_s25 + $0x88] sm:$0xff] %vm569_vm1, %v522_v61  ;;  %586 = vst.msk [vmem:[%s1080_s25 + $0x80] sm:$0xff] %vm569_vm1, %v521_v62 }
  0xc6   : > { %v370_v60 = vpop.xlane.xlu1 %369  ;;  %v367_v4 = vpop.xlane.xlu0 %366 }
  0xc7   : > { %v524_v5 = vadd.f32 %v1073_v0, %v370_v60  ;;  %v523_v6 = vadd.f32 %v1073_v0, %v367_v4 }
  0xc9   : > { %589 = vst.msk [vmem:[%s1080_s25 + $0x98] sm:$0xff] %vm569_vm1, %v524_v5  ;;  %588 = vst.msk [vmem:[%s1080_s25 + $0x90] sm:$0xff] %vm569_vm1, %v523_v6 }
  0xca   : > { %v376_v7 = vpop.xlane.xlu1 %375  ;;  %v373_v14 = vpop.xlane.xlu0 %372 }
  0xcb   : > { %v526_v15 = vadd.f32 %v1073_v0, %v376_v7  ;;  %v525_v20 = vadd.f32 %v1073_v0, %v373_v14 }
  0xcd   : > { %591 = vst.msk [vmem:[%s1080_s25 + $0xa8] sm:$0xff] %vm569_vm1, %v526_v15  ;;  %590 = vst.msk [vmem:[%s1080_s25 + $0xa0] sm:$0xff] %vm569_vm1, %v525_v20 }
  0xce   : > { %v382_v51 = vpop.xlane.xlu1 %381  ;;  %v379_v55 = vpop.xlane.xlu0 %378 }
  0xcf   : > { %v528_v22 = vadd.f32 %v1073_v0, %v382_v51  ;;  %v527_v23 = vadd.f32 %v1073_v0, %v379_v55 }
  0xd1   : > { %593 = vst.msk [vmem:[%s1080_s25 + $0xb8] sm:$0xff] %vm569_vm1, %v528_v22  ;;  %592 = vst.msk [vmem:[%s1080_s25 + $0xb0] sm:$0xff] %vm569_vm1, %v527_v23 }
  0xd2   : > { %v388_v25 = vpop.xlane.xlu1 %387  ;;  %v385_v27 = vpop.xlane.xlu0 %384 }
  0xd3   : > { %v530_v28 = vadd.f32 %v1073_v0, %v388_v25  ;;  %v529_v32 = vadd.f32 %v1073_v0, %v385_v27 }
  0xd5   : > { %595 = vst.msk [vmem:[%s1080_s25 + $0xc8] sm:$0xff] %vm569_vm1, %v530_v28  ;;  %594 = vst.msk [vmem:[%s1080_s25 + $0xc0] sm:$0xff] %vm569_vm1, %v529_v32 }
  0xd6   : > { %v394_v39 = vpop.xlane.xlu1 %393  ;;  %v391_v43 = vpop.xlane.xlu0 %390 }
  0xd7   : > { %v532_v56 = vadd.f32 %v1073_v0, %v394_v39  ;;  %v531_v2 = vadd.f32 %v1073_v0, %v391_v43 }
  0xd9   : > { %597 = vst.msk [vmem:[%s1080_s25 + $0xd8] sm:$0xff] %vm569_vm1, %v532_v56  ;;  %596 = vst.msk [vmem:[%s1080_s25 + $0xd0] sm:$0xff] %vm569_vm1, %v531_v2 }
  0xda   : > { %v400_v46 = vpop.xlane.xlu1 %399  ;;  %v397_v47 = vpop.xlane.xlu0 %396 }
  0xdb   : > { %v534_v57 = vadd.f32 %v1073_v0, %v400_v46  ;;  %v533_v49 = vadd.f32 %v1073_v0, %v397_v47 }
  0xdd   : > { %599 = vst.msk [vmem:[%s1080_s25 + $0xe8] sm:$0xff] %vm569_vm1, %v534_v57  ;;  %598 = vst.msk [vmem:[%s1080_s25 + $0xe0] sm:$0xff] %vm569_vm1, %v533_v49 }
  0xde   : > { %v406_v58 = vpop.xlane.xlu1 %405  ;;  %v403_v52 = vpop.xlane.xlu0 %402 }
  0xdf   : > { %v536_v53 = vadd.f32 %v1073_v0, %v406_v58  ;;  %v535_v9 = vadd.f32 %v1073_v0, %v403_v52 }
  0xe1   : > { %601 = vst.msk [vmem:[%s1080_s25 + $0xf8] sm:$0xff] %vm569_vm1, %v536_v53  ;;  %600 = vst.msk [vmem:[%s1080_s25 + $0xf0] sm:$0xff] %vm569_vm1, %v535_v9 }
  0xe2   : > { %v412_v10 = vpop.xlane.xlu1 %411  ;;  %v409_v11 = vpop.xlane.xlu0 %408 }
  0xe3   : > { %v538_v16 = vadd.f32 %v1073_v0, %v412_v10  ;;  %v537_v17 = vadd.f32 %v1073_v0, %v409_v11 }
  0xe5   : > { %603 = vst.msk [vmem:[%s1080_s25 + $0x108] sm:$0xff] %vm569_vm1, %v538_v16  ;;  %602 = vst.msk [vmem:[%s1080_s25 + $0x100] sm:$0xff] %vm569_vm1, %v537_v17 }
  0xe6   : > { %v418_v18 = vpop.xlane.xlu1 %417  ;;  %v415_v21 = vpop.xlane.xlu0 %414 }
  0xe7   : > { %v540_v26 = vadd.f32 %v1073_v0, %v418_v18  ;;  %v539_v33 = vadd.f32 %v1073_v0, %v415_v21 }
  0xe9   : > { %605 = vst.msk [vmem:[%s1080_s25 + $0x118] sm:$0xff] %vm569_vm1, %v540_v26  ;;  %604 = vst.msk [vmem:[%s1080_s25 + $0x110] sm:$0xff] %vm569_vm1, %v539_v33 }
  0xea   : > { %v424_v34 = vpop.xlane.xlu1 %423  ;;  %v421_v35 = vpop.xlane.xlu0 %420 }
  0xeb   : > { %v542_v40 = vadd.f32 %v1073_v0, %v424_v34  ;;  %v541_v41 = vadd.f32 %v1073_v0, %v421_v35 }
  0xed   : > { %607 = vst.msk [vmem:[%s1080_s25 + $0x128] sm:$0xff] %vm569_vm1, %v542_v40  ;;  %606 = vst.msk [vmem:[%s1080_s25 + $0x120] sm:$0xff] %vm569_vm1, %v541_v41 }
  0xee   : > { %v430_v42 = vpop.xlane.xlu1 %429  ;;  %v427_v45 = vpop.xlane.xlu0 %426 }
  0xef   : > { %v544_v50 = vadd.f32 %v1073_v0, %v430_v42  ;;  %v543_v63 = vadd.f32 %v1073_v0, %v427_v45 }
  0xf1   : > { %609 = vst.msk [vmem:[%s1080_s25 + $0x138] sm:$0xff] %vm569_vm1, %v544_v50  ;;  %608 = vst.msk [vmem:[%s1080_s25 + $0x130] sm:$0xff] %vm569_vm1, %v543_v63 }
  0xf2   : > { %v436_v1 = vpop.xlane.xlu1 %435  ;;  %v433_v3 = vpop.xlane.xlu0 %432 }
  0xf3   : > { %v546_v8 = vadd.f32 %v1073_v0, %v436_v1  ;;  %v545_v12 = vadd.f32 %v1073_v0, %v433_v3 }
  0xf5   : > { %611 = vst.msk [vmem:[%s1080_s25 + $0x148] sm:$0xff] %vm569_vm1, %v546_v8  ;;  %610 = vst.msk [vmem:[%s1080_s25 + $0x140] sm:$0xff] %vm569_vm1, %v545_v12 }
  0xf6   : > { %v442_v13 = vpop.xlane.xlu1 %441  ;;  %v439_v19 = vpop.xlane.xlu0 %438 }
  0xf7   : > { %v548_v24 = vadd.f32 %v1073_v0, %v442_v13  ;;  %v547_v29 = vadd.f32 %v1073_v0, %v439_v19 }
  0xf9   : > { %613 = vst.msk [vmem:[%s1080_s25 + $0x158] sm:$0xff] %vm569_vm1, %v548_v24  ;;  %612 = vst.msk [vmem:[%s1080_s25 + $0x150] sm:$0xff] %vm569_vm1, %v547_v29 }
  0xfa   : > { %v448_v30 = vpop.xlane.xlu1 %447  ;;  %v445_v31 = vpop.xlane.xlu0 %444 }
  0xfb   : > { %v550_v36 = vadd.f32 %v1073_v0, %v448_v30  ;;  %v549_v37 = vadd.f32 %v1073_v0, %v445_v31 }
  0xfd   : > { %615 = vst.msk [vmem:[%s1080_s25 + $0x168] sm:$0xff] %vm569_vm1, %v550_v36  ;;  %614 = vst.msk [vmem:[%s1080_s25 + $0x160] sm:$0xff] %vm569_vm1, %v549_v37 }
  0xfe   : > { %v454_v38 = vpop.xlane.xlu1 %453  ;;  %v451_v44 = vpop.xlane.xlu0 %450 }
  0xff   : > { %v552_v48 = vadd.f32 %v1073_v0, %v454_v38  ;;  %v551_v54 = vadd.f32 %v1073_v0, %v451_v44 }
 0x101   : > { %617 = vst.msk [vmem:[%s1080_s25 + $0x178] sm:$0xff] %vm569_vm1, %v552_v48  ;;  %616 = vst.msk [vmem:[%s1080_s25 + $0x170] sm:$0xff] %vm569_vm1, %v551_v54 }
 0x102   : > { %v460_v59 = vpop.xlane.xlu1 %459  ;;  %v457_v61 = vpop.xlane.xlu0 %456 }
 0x103   : > { %v554_v62 = vadd.f32 %v1073_v0, %v460_v59  ;;  %v553_v60 = vadd.f32 %v1073_v0, %v457_v61 }
 0x105   : > { %619 = vst.msk [vmem:[%s1080_s25 + $0x188] sm:$0xff] %vm569_vm1, %v554_v62  ;;  %618 = vst.msk [vmem:[%s1080_s25 + $0x180] sm:$0xff] %vm569_vm1, %v553_v60 }
 0x106   : > { %v466_v4 = vpop.xlane.xlu1 %465  ;;  %v463_v5 = vpop.xlane.xlu0 %462 }
 0x107   : > { %v556_v6 = vadd.f32 %v1073_v0, %v466_v4  ;;  %v555_v7 = vadd.f32 %v1073_v0, %v463_v5 }
 0x109   : > { %621 = vst.msk [vmem:[%s1080_s25 + $0x198] sm:$0xff] %vm569_vm1, %v556_v6  ;;  %620 = vst.msk [vmem:[%s1080_s25 + $0x190] sm:$0xff] %vm569_vm1, %v555_v7 }
 0x10a   : > { %v472_v14 = vpop.xlane.xlu1 %471  ;;  %v469_v15 = vpop.xlane.xlu0 %468 }
 0x10b   : > { %v558_v20 = vadd.f32 %v1073_v0, %v472_v14  ;;  %v557_v51 = vadd.f32 %v1073_v0, %v469_v15 }
 0x10d   : > { %623 = vst.msk [vmem:[%s1080_s25 + $0x1a8] sm:$0xff] %vm569_vm1, %v558_v20  ;;  %622 = vst.msk [vmem:[%s1080_s25 + $0x1a0] sm:$0xff] %vm569_vm1, %v557_v51 }
 0x10e   : > { %v478_v55 = vpop.xlane.xlu1 %477  ;;  %v475_v22 = vpop.xlane.xlu0 %474 }
 0x10f   : > { %v560_v23 = vadd.f32 %v1073_v0, %v478_v55  ;;  %v559_v25 = vadd.f32 %v1073_v0, %v475_v22 }
 0x111   : > { %625 = vst.msk [vmem:[%s1080_s25 + $0x1b8] sm:$0xff] %vm569_vm1, %v560_v23  ;;  %624 = vst.msk [vmem:[%s1080_s25 + $0x1b0] sm:$0xff] %vm569_vm1, %v559_v25 }
 0x112   : > { %v484_v27 = vpop.xlane.xlu1 %483  ;;  %v481_v28 = vpop.xlane.xlu0 %480 }
 0x113   : > { %v562_v32 = vadd.f32 %v1073_v0, %v484_v27  ;;  %v561_v39 = vadd.f32 %v1073_v0, %v481_v28 }
 0x115   : > { %627 = vst.msk [vmem:[%s1080_s25 + $0x1c8] sm:$0xff] %vm569_vm1, %v562_v32  ;;  %626 = vst.msk [vmem:[%s1080_s25 + $0x1c0] sm:$0xff] %vm569_vm1, %v561_v39 }
 0x116   : > { %v490_v43 = vpop.xlane.xlu1 %489  ;;  %v487_v56 = vpop.xlane.xlu0 %486 }
 0x117   : > { %v564_v2 = vadd.f32 %v1073_v0, %v490_v43  ;;  %v563_v46 = vadd.f32 %v1073_v0, %v487_v56 }
 0x119   : > { %629 = vst.msk [vmem:[%s1080_s25 + $0x1d8] sm:$0xff] %vm569_vm1, %v564_v2  ;;  %628 = vst.msk [vmem:[%s1080_s25 + $0x1d0] sm:$0xff] %vm569_vm1, %v563_v46 }
 0x11a   : > { %v496_v47 = vpop.xlane.xlu1 %495  ;;  %v493_v57 = vpop.xlane.xlu0 %492 }
 0x11b   : > { %v566_v49 = vadd.f32 %v1073_v0, %v496_v47  ;;  %v565_v58 = vadd.f32 %v1073_v0, %v493_v57 }
 0x11d   : > { %631 = vst.msk [vmem:[%s1080_s25 + $0x1e8] sm:$0xff] %vm569_vm1, %v566_v49  ;;  %630 = vst.msk [vmem:[%s1080_s25 + $0x1e0] sm:$0xff] %vm569_vm1, %v565_v58 }
 0x11e   : > { %v502_v52 = vpop.xlane.xlu1 %501  ;;  %v499_v53 = vpop.xlane.xlu0 %498 }
 0x11f   : > { %v568_v9 = vadd.f32 %v1073_v0, %v502_v52  ;;  %v567_v10 = vadd.f32 %v1073_v0, %v499_v53 }
 0x121   : > { %633 = vst.msk [vmem:[%s1080_s25 + $0x1f8] sm:$0xff] %vm569_vm1, %v568_v9  ;;  %632 = vst.msk [vmem:[%s1080_s25 + $0x1f0] sm:$0xff] %vm569_vm1, %v567_v10 }
 0x122 PF: > { %s14_s14 = sadd.s32 1, %s716_s14  }
 0x123   : > { %p11_p4 = scmp.ge.s32.totalorder %s14_s14, 4  }
 0x125   :  { %13 = sbr.rel (!%p11_p4) target bundleno = 2 (0x2), region = 62 }

</bundles_post_ra>
